<compile_context>
chip_gen: v7x
topology: tpu7x:2x2x1
jax: 0.10.0
libtpu: 0.0.40
codegen_flags: <defaults>
</compile_context>

<pallas_src>
import functools

import jax
import jax.numpy as jnp
from jax.experimental import pallas as pl
from jax.experimental.pallas import tpu as pltpu


def _round_up(n, m):
    return ((n + m - 1) // m) * m


def _ltc_kernel(xh_ref, h_ref, w_ref, b_ref, out_h_ref, out_dx_ref, *, tau):
    # Single fused matmul: [x | h] @ [W_in ; W_h] + (b_in + b_h)
    combined = jnp.dot(xh_ref[...], w_ref[...],
                       preferred_element_type=jnp.float32)
    combined = combined + b_ref[...].astype(jnp.float32)

    tce = jax.nn.sigmoid(combined)                      # time_constant_effect

    # Reference: dtc = clip(tau / (1 + tau*tce), 0.1, 1.0); dx = tce*c - h/dtc
    # Since tce > 0 and tau > 0, tau/(1+tau*tce) > 0, so
    #   1/dtc = clip((1 + tau*tce)/tau, 1.0, 10.0)
    # which turns the per-element divide into a multiply.
    inv_dtc = jnp.clip((1.0 + tau * tce) * (1.0 / tau), 1.0, 10.0)

    h = h_ref[...].astype(jnp.float32)
    dx_dt = tce * combined - h * inv_dtc
    out_h_ref[...] = (h + dx_dt).astype(out_h_ref.dtype)
    out_dx_ref[...] = dx_dt.astype(out_dx_ref.dtype)


def ltc_forward(x, hidden_state, w_in, b_in, w_h, b_h, tau=1.0, block_b=256):
    """LTC forward.

    Args:
      x:            (B, D_in)
      hidden_state: (B, H)
      w_in:         (D_in, H)   (transposed vs. torch.nn.Linear.weight)
      b_in:         (1, H)
      w_h:          (H, H)
      b_h:          (1, H)
      tau:          python float (static)
    Returns:
      (updated_hidden, dx_dt), each (B, H).
    """
    B, D_in = x.shape
    H = hidden_state.shape[1]
    K = D_in + H
    out_dtype = x.dtype

    # Lane-dense hidden dim (multiple of 128); batch tile multiple of 8.
    Hp = _round_up(H, 128)
    TB = min(_round_up(B, 8), block_b)
    Bp = _round_up(B, TB)

    # Fuse weights / biases in the wrapper (one-time XLA ops).
    w_cat = jnp.concatenate([w_in, w_h], axis=0)                # (K, H)
    w_cat = jnp.pad(w_cat, ((0, 0), (0, Hp - H)))               # (K, Hp)
    b_cat = jnp.pad((b_in + b_h).reshape(1, H),
                    ((0, 0), (0, Hp - H)))                      # (1, Hp)

    x_p = jnp.pad(x, ((0, Bp - B), (0, 0)))                     # (Bp, D_in)
    h_p = jnp.pad(hidden_state, ((0, Bp - B), (0, Hp - H)))     # (Bp, Hp)
    h_p = h_p.astype(out_dtype)
    xh = jnp.concatenate([x_p, h_p[:, :H]], axis=-1)            # (Bp, K)

    grid = (Bp // TB,)

    out_shape = (
        jax.ShapeDtypeStruct((Bp, Hp), out_dtype),
        jax.ShapeDtypeStruct((Bp, Hp), out_dtype),
    )

    kernel = pl.pallas_call(
        functools.partial(_ltc_kernel, tau=float(tau)),
        out_shape=out_shape,
        grid_spec=pltpu.PrefetchScalarGridSpec(
            num_scalar_prefetch=0,
            grid=grid,
            in_specs=[
                pl.BlockSpec((TB, K), lambda i: (i, 0)),     # xh
                pl.BlockSpec((TB, Hp), lambda i: (i, 0)),    # h
                pl.BlockSpec((K, Hp), lambda i: (0, 0)),     # W_cat (resident)
                pl.BlockSpec((1, Hp), lambda i: (0, 0)),     # b_cat (resident)
            ],
            out_specs=[
                pl.BlockSpec((TB, Hp), lambda i: (i, 0)),    # updated_hidden
                pl.BlockSpec((TB, Hp), lambda i: (i, 0)),    # dx_dt
            ],
        ),
        compiler_params=pltpu.CompilerParams(
            dimension_semantics=("parallel",)),
        # Reuse the (padded) hidden-state buffer for updated_hidden.
        input_output_aliases={1: 0},
    )
    out_h, out_dx = kernel(xh, h_p, w_cat, b_cat)
    return out_h[:B, :H], out_dx[:B, :H]


def init_ltc_params(key, input_size, hidden_size, dtype=jnp.float32):
    """Deterministic synthetic parameters (matches nn.Linear shapes)."""
    k1, k2, k3, k4 = jax.random.split(key, 4)
    # torch nn.Linear weight is (out, in); we store transposed (in, out).
    bound_in = 1.0 / jnp.sqrt(input_size)
    bound_h = 1.0 / jnp.sqrt(hidden_size)
    w_in = jax.random.uniform(k1, (input_size, hidden_size), dtype,
                              -bound_in, bound_in)
    b_in = jax.random.uniform(k2, (1, hidden_size), dtype, -bound_in, bound_in)
    w_h = jax.random.uniform(k3, (hidden_size, hidden_size), dtype,
                             -bound_h, bound_h)
    b_h = jax.random.uniform(k4, (1, hidden_size), dtype, -bound_h, bound_h)
    return w_in, b_in, w_h, b_h


def ltc_reference(x, h, w_in, b_in, w_h, b_h, tau=1.0):
    """Pure-JAX reference (mirrors the PyTorch forward exactly)."""
    prec = jax.lax.Precision.HIGHEST
    input_effect = jnp.dot(x, w_in, precision=prec) + b_in
    hidden_effect = jnp.dot(h, w_h, precision=prec) + b_h
    combined = input_effect + hidden_effect
    tce = jax.nn.sigmoid(combined)
    dtc = jnp.clip(tau / (1.0 + tau * tce), 0.1, 1.0)
    dx_dt = tce * combined - h / dtc
    return h + dx_dt, dx_dt


if __name__ == "__main__":
    key = jax.random.PRNGKey(0)
    batch, input_size, hidden_size = 8, 16, 32
    tau = 1.0

    kx, kh, kp = jax.random.split(key, 3)
    x = jax.random.normal(kx, (batch, input_size), jnp.float32)
    hidden = jax.random.normal(kh, (batch, hidden_size), jnp.float32)
    w_in, b_in, w_h, b_h = init_ltc_params(kp, input_size, hidden_size)

    fwd = jax.jit(functools.partial(ltc_forward, tau=tau))
    updated_hidden, dx_dt = fwd(x, hidden, w_in, b_in, w_h, b_h)
    jax.block_until_ready((updated_hidden, dx_dt))

    ref_h, ref_dx = ltc_reference(x, hidden, w_in, b_in, w_h, b_h, tau)
    assert updated_hidden.shape == ref_h.shape and dx_dt.shape == ref_dx.shape
    assert jnp.allclose(updated_hidden, ref_h, atol=2e-5, rtol=2e-5)
    assert jnp.allclose(dx_dt, ref_dx, atol=2e-5, rtol=2e-5)

    print("KERNEL_OK")
</pallas_src>

<mosaic_0001>
module attributes {stable_mosaic.version = 11 : i64} {
  func.func @_ltc_kernel(%arg0: i32, %arg1: memref<8x48xf32, #tpu.memory_space<vmem>>, %arg2: memref<8x128xf32, #tpu.memory_space<vmem>>, %arg3: memref<48x128xf32, #tpu.memory_space<vmem>>, %arg4: memref<1x128xf32, #tpu.memory_space<vmem>>, %arg5: memref<8x128xf32, #tpu.memory_space<vmem>>, %arg6: memref<8x128xf32, #tpu.memory_space<vmem>>) attributes {dimension_semantics = [#tpu.dimension_semantics<parallel>], iteration_bounds = array<i64: 1>, scalar_prefetch = 0 : i64, scratch_operands = 0 : i64, tpu.core_type = #tpu.core_type<tc>, window_params = [{transform_indices = @transform_0, window_bounds = array<i64: 8, 48>}, {transform_indices = @transform_1, window_bounds = array<i64: 8, 128>}, {pipeline_mode = #tpu.pipeline_mode<synchronous>, transform_indices = @transform_2, window_bounds = array<i64: 48, 128>}, {pipeline_mode = #tpu.pipeline_mode<synchronous>, transform_indices = @transform_3, window_bounds = array<i64: 1, 128>}, {transform_indices = @transform_4, window_bounds = array<i64: 8, 128>}, {transform_indices = @transform_5, window_bounds = array<i64: 8, 128>}]} {
    %c0 = arith.constant 0 : index
    %c0_0 = arith.constant 0 : index
    %0 = vector.load %arg1[%c0, %c0_0] : memref<8x48xf32, #tpu.memory_space<vmem>>, vector<8x48xf32>
    %c0_1 = arith.constant 0 : index
    %c0_2 = arith.constant 0 : index
    %1 = vector.load %arg3[%c0_1, %c0_2] : memref<48x128xf32, #tpu.memory_space<vmem>>, vector<48x128xf32>
    %cst = arith.constant dense<0.000000e+00> : vector<8x128xf32>
    %2 = tpu.matmul %0, %1, %cst {dimension_numbers = #tpu.dot_dimension_numbers<[1], [0], [0], [1], [0, 0, 1, 1], [], []>} : vector<8x48xf32>, vector<48x128xf32>, vector<8x128xf32> -> vector<8x128xf32>
    %c0_3 = arith.constant 0 : index
    %c0_4 = arith.constant 0 : index
    %3 = vector.load %arg4[%c0_3, %c0_4] : memref<1x128xf32, #tpu.memory_space<vmem>>, vector<1x128xf32>
    %4 = vector.broadcast %3 : vector<1x128xf32> to vector<8x128xf32>
    %5 = arith.addf %2, %4 : vector<8x128xf32>
    %6 = arith.negf %5 : vector<8x128xf32>
    %7 = math.exp %6 : vector<8x128xf32>
    %cst_5 = arith.constant 1.000000e+00 : f32
    %8 = vector.broadcast %cst_5 : f32 to vector<8x128xf32>
    %9 = arith.addf %8, %7 : vector<8x128xf32>
    %10 = arith.divf %8, %9 : vector<8x128xf32>
    %cst_6 = arith.constant 1.000000e+00 : f32
    %11 = vector.broadcast %cst_6 : f32 to vector<8x128xf32>
    %12 = arith.mulf %11, %10 : vector<8x128xf32>
    %cst_7 = arith.constant 1.000000e+00 : f32
    %13 = vector.broadcast %cst_7 : f32 to vector<8x128xf32>
    %14 = arith.addf %13, %12 : vector<8x128xf32>
    %cst_8 = arith.constant 1.000000e+00 : f32
    %15 = vector.broadcast %cst_8 : f32 to vector<8x128xf32>
    %16 = arith.mulf %14, %15 : vector<8x128xf32>
    %cst_9 = arith.constant 1.000000e+00 : f32
    %cst_10 = arith.constant 1.000000e+01 : f32
    %17 = vector.broadcast %cst_9 : f32 to vector<8x128xf32>
    %18 = arith.maximumf %17, %16 : vector<8x128xf32>
    %19 = vector.broadcast %cst_10 : f32 to vector<8x128xf32>
    %20 = arith.minimumf %19, %18 : vector<8x128xf32>
    %c0_11 = arith.constant 0 : index
    %c0_12 = arith.constant 0 : index
    %21 = vector.load %arg2[%c0_11, %c0_12] : memref<8x128xf32, #tpu.memory_space<vmem>>, vector<8x128xf32>
    %22 = arith.mulf %10, %5 : vector<8x128xf32>
    %23 = arith.mulf %21, %20 : vector<8x128xf32>
    %24 = arith.subf %22, %23 : vector<8x128xf32>
    %25 = arith.addf %21, %24 : vector<8x128xf32>
    %c0_13 = arith.constant 0 : index
    %c0_14 = arith.constant 0 : index
    %26 = vector.load %arg5[%c0_13, %c0_14] : memref<8x128xf32, #tpu.memory_space<vmem>>, vector<8x128xf32>
    tpu.vector_store %arg5[%c0_13, %c0_14], %25 {strides = array<i32>} : memref<8x128xf32, #tpu.memory_space<vmem>>, vector<8x128xf32>,
    %c0_15 = arith.constant 0 : index
    %c0_16 = arith.constant 0 : index
    %27 = vector.load %arg6[%c0_15, %c0_16] : memref<8x128xf32, #tpu.memory_space<vmem>>, vector<8x128xf32>
    tpu.vector_store %arg6[%c0_15, %c0_16], %24 {strides = array<i32>} : memref<8x128xf32, #tpu.memory_space<vmem>>, vector<8x128xf32>,
    return
  }
  func.func @transform_0(%arg0: i32) -> (i32, i32) {
    %c0_i32 = arith.constant 0 : i32
    %c0_i32_0 = arith.constant 0 : i32
    return %arg0, %c0_i32 : i32, i32
  }
  func.func @transform_1(%arg0: i32) -> (i32, i32) {
    %c0_i32 = arith.constant 0 : i32
    %c0_i32_0 = arith.constant 0 : i32
    return %arg0, %c0_i32 : i32, i32
  }
  func.func @transform_2(%arg0: i32) -> (i32, i32) {
    %c0_i32 = arith.constant 0 : i32
    %c0_i32_0 = arith.constant 0 : i32
    %c0_i32_1 = arith.constant 0 : i32
    return %c0_i32, %c0_i32_0 : i32, i32
  }
  func.func @transform_3(%arg0: i32) -> (i32, i32) {
    %c0_i32 = arith.constant 0 : i32
    %c0_i32_0 = arith.constant 0 : i32
    %c0_i32_1 = arith.constant 0 : i32
    return %c0_i32, %c0_i32_0 : i32, i32
  }
  func.func @transform_4(%arg0: i32) -> (i32, i32) {
    %c0_i32 = arith.constant 0 : i32
    %c0_i32_0 = arith.constant 0 : i32
    return %arg0, %c0_i32 : i32, i32
  }
  func.func @transform_5(%arg0: i32) -> (i32, i32) {
    %c0_i32 = arith.constant 0 : i32
    %c0_i32_0 = arith.constant 0 : i32
    return %arg0, %c0_i32 : i32, i32
  }
}

</mosaic_0001>

<bundles_post_ra>
// kernel: ltc_forward.1
= control target key start
LH: loop header
LB: loop body
LE: loop exit
PB: predicated region body
PF: predicated region fallthrough
CT: control target
= control target key end

     0   :  { %v208_v3 = vmov 0.0|0.0   ;;  %vm209_vm0 = vmmov 0   ;;  %v210_v6 = vmov 0.0   ;;  %s284_s0 = inlined_call_operand.vmem [shape: f32[8,48], index: 0, kind: input, shape index: {}]   ;;  %s285_s1 = inlined_call_operand.vmem [shape: f32[8,128], index: 1, kind: input, shape index: {}, may-alias: {1,4}]   ;;  %s286_s2 = inlined_call_operand.vmem [shape: f32[48,128], index: 2, kind: input, shape index: {}]   ;;  %s287_s3 = inlined_call_operand.vmem [shape: f32[1,128], index: 3, kind: input, shape index: {}]   ;;  %s288_s4 = inlined_call_operand.vmem [shape: f32[8,128], index: 4, kind: output, shape index: {0}, may-alias: {1,4}]   ;;  %s289_s5 = inlined_call_operand.hbm [shape: f32[8,128], index: 5, kind: output, shape index: {1}]  }
   0x1   :  { %v21_v0 = vld [vmem:[%s286_s2] sm:$0xff]  ;;  %v22_v1 = vld [vmem:[%s286_s2 + $0x8] sm:$0xff]  ;;  %v23_v2 = vld [vmem:[%s286_s2 + $0x10] sm:$0xff]  ;;  %167 = vmatprep.subr.bf16.mxu0 %v208_v3  ;;  %164 = vmatprep.mubr.msk.f32.mxu0 %vm209_vm0, %v210_v6 }
   0x2   :  { %v168_v4 = vpack.c.bf16 %v22_v1, %v21_v0  ;;  %v24_v5 = vld [vmem:[%s286_s2 + $0x18] sm:$0xff] }
   0x3   :  { %11 = vsyncpa [#allocation3], 0  ;;  %v171_v7 = vpack.c.bf16 %v24_v5, %v23_v2  ;;  %v25_v8 = vld [vmem:[%s286_s2 + $0x20] sm:$0xff]  ;;  %v26_v9 = vld [vmem:[%s286_s2 + $0x28] sm:$0xff]  ;;  %vm34_vm1 = vcmask 392192  }
   0x4   :  { %169 = vmatpush3.bf16.msra.mxu0 %v168_v4  ;;  %v174_v10 = vpack.c.bf16 %v26_v9, %v25_v8  ;;  %v20_v11 = vld [vmem:[%s284_s0] sm:$0xff]  ;;  %s211_s0 = smov [#allocation2]  }
   0x5   :  { %170 = vmatprep.subr.bf16.mxu0 %v208_v3  ;;  %v142_v12 = vld [vmem:[%s287_s3] ss:$0 sm:$0xff]  ;;  %s132_s10 = sshll.u32 %s211_s0, 4  ;;  %s133_s10 = int_to_ptr.vmem [resolvable:$true] %s132_s10 }
   0x6   :  { %v117_v22 = vld [vmem:[%s285_s1] sm:$0xff]  ;;  %s184_s3 = scalar_lea.vmem %s133_s10, 128  ;;  %p189_p1 = scmp.lt.s32.totalorder %s133_s10, %s133_s10 }
   0x7   :  { %p185_p0 = scmp.ne.s32.totalorder %s133_s10, %s184_s3  ;;  %p190_p2 = scmp.lt.s32.totalorder %s184_s3, %s184_s3 }
   0x8   :  { %172 = vmatpush3.bf16.msra.mxu0 %v171_v7 }
   0x9   :  { %173 = vmatprep.subr.bf16.mxu0 %v208_v3  ;;  %p191_p3 = por %p190_p2, %p189_p1 }
   0xb   :  { %p192_p4 = pnand %p191_p3, %p185_p0 }
   0xc   :  { %175 = vmatpush3.bf16.msra.mxu0 %v174_v10 }
   0xf   :  { %165 = vmatmul.mubr.msk.f32.vlgmr.msra.gmra.mrb[0].mxu0 %vm34_vm1, %v20_v11 }
  0xe2   :  { %v104_v13 = vpop.f32.mrb[0].mxu0 }
  0xe3   :  { %v105_v14 = vadd.f32 %v142_v12, %v104_v13  ;;  %v166_v15 = vpop.f32.mrb[1].mxu0 }
  0xe5   :  { %v144_v16 = vmul.f32 -1.442695, %v105_v14 }
  0xe7   :  { %180 = vpow2.f32 %v144_v16 }
  0xf1   :  { %v181_v17 = vpop.eup %180 }
  0xf2   :  { %v111_v18 = vadd.f32 1.0, %v181_v17 }
  0xf4   :  { %182 = vrcp.f32 %v111_v18 }
  0xfe   :  { %v183_v19 = vpop.eup %182 }
  0xff   :  { %v114_v20 = vadd.f32 1.0, %v183_v19  ;;  %v118_v24 = vmul.f32 %v183_v19, %v105_v14 }
 0x101   :  { %v115_v21 = vmax.f32 %v114_v20, 1.0 }
 0x103   :  { %v116_v23 = vmin.f32 %v115_v21, 10.0 }
 0x105   :  { %v119_v25 = vmul.f32 %v117_v22, %v116_v23 }
 0x107   :  { %v120_v26 = vsub.f32 %v118_v24, %v119_v25 }
 0x109   :  { %v121_v27 = vadd.f32 %v120_v26, %v117_v22  ;;  %123 = vst [vmem:[#allocation2] sm:$0xff] %v120_v26 }
 0x10a   :  { %195 = shalt.err (!%p192_p4)
}
 0x10b   :  { %s196_s1 = scalar_lea.hbm %s289_s5, 128 }
 0x10c   :  { %p197_p5 = scmp.ne.s32.totalorder %s289_s5, %s196_s1  ;;  %p200_p6 = scmp.lt.u32.totalorder %s196_s1, %s289_s5 }
 0x10e   :  { %p202_p7 = pnand %p200_p6, %p197_p5 }
 0x110   :  { %205 = shalt.err (!%p202_p7)
}
 0x111   :  { %135 = dma.vmem_to_hbm [thread:$0]  %s133_s10, 128, %s289_s5, [#allocation3]   ;;  %122 = vst [vmem:[%s288_s4] sm:$0xff] %v121_v27 }
 0x112   :  { %206 = dma.done.wait [#allocation3], 128  }
 0x113   :  { %207 = vsyncadd [#allocation3], 4294967168 }
 0x114   :  { %141 = vsyncpa [#allocation3], 1 }

</bundles_post_ra>
